<compile_context>
chip_gen: v7x
topology: tpu7x:2x2x1
jax: 0.10.0
libtpu: 0.0.40
codegen_flags: <defaults>
</compile_context>

<pallas_src>
import functools

import jax
import jax.numpy as jnp
from jax.experimental import pallas as pl
from jax.experimental.pallas import tpu as pltpu


def _round_up(x, m):
    return ((x + m - 1) // m) * m


def _min_sublane(dtype):
    # Minimal sublane tile for the second-to-last dim: 8 (4B), 16 (2B), 32 (1B).
    return max(8, 32 // jnp.dtype(dtype).itemsize)


def _tpu_config():
    """Returns (vmem_budget_bytes, multi_tensorcore) for the current chip generation."""
    try:
        vmem = int(pltpu.get_tpu_info().vmem_capacity_bytes)
    except Exception:
        return 40 << 20, False
    if vmem <= (64 << 20):                           # v7x: 64 MiB per TC, 2 TCs/chip
        return min(int(vmem * 0.70), 46 << 20), True
    return min(int(vmem * 0.75), 96 << 20), False    # v5e/v6e: 128 MiB, 1 TC


def prepare_flatten_head_params(weight, bias, *, param_dtype=jnp.bfloat16):
    """One-time (model-load) preparation of the nn.Linear parameters.

    weight : [target_window, nf]   (PyTorch nn.Linear layout)
    bias   : [target_window]
    Returns (w_t, b_row, target_window) where
      w_t   : [nf, N_pad]  pre-transposed, cast to param_dtype, lane-padded with zeros
      b_row : [1,  N_pad]  f32; padded lanes hold -1e30 so an optional softmax stays
                           exact (padded lanes are sliced off by the caller anyway).
    """
    target_window, nf = weight.shape
    n_pad = _round_up(target_window, 128)
    w_t = jnp.asarray(weight).T.astype(param_dtype)
    b_row = jnp.asarray(bias).astype(jnp.float32).reshape(1, target_window)
    if n_pad != target_window:
        w_t = jnp.pad(w_t, ((0, 0), (0, n_pad - target_window)))
        b_row = jnp.pad(b_row, ((0, 0), (0, n_pad - target_window)),
                        constant_values=-1e30)
    return w_t, b_row, target_window


def _kernel_resident(x_ref, wt_ref, b_ref, o_ref, *, soft):
    # Full reduction in one step: no accumulator scratch, no init/finalize.
    # x is cast to the weight dtype in-kernel (free VPU op) instead of a wrapper pass.
    y = jnp.dot(x_ref[...].astype(wt_ref.dtype), wt_ref[...],
                preferred_element_type=jnp.float32) + b_ref[...]
    if soft:
        m = jnp.max(y, axis=-1, keepdims=True)
        e = jnp.exp(y - m)
        y = e * pl.reciprocal(jnp.sum(e, axis=-1, keepdims=True), approx=True)
    o_ref[...] = y.astype(o_ref.dtype)


def _kernel_ktiled(x_ref, wt_ref, b_ref, o_ref, acc_ref, *, soft):
    k = pl.program_id(1)
    part = jnp.dot(x_ref[...].astype(wt_ref.dtype), wt_ref[...],
                   preferred_element_type=jnp.float32)

    @pl.when(k == 0)
    def _first():
        acc_ref[...] = part          # direct write: no zero-init + read-modify-write

    @pl.when(k > 0)
    def _accumulate():
        acc_ref[...] += part

    @pl.when(k == pl.num_programs(1) - 1)
    def _finalize():
        y = acc_ref[...] + b_ref[...]
        if soft:
            m = jnp.max(y, axis=-1, keepdims=True)
            e = jnp.exp(y - m)
            y = e * pl.reciprocal(jnp.sum(e, axis=-1, keepdims=True), approx=True)
        o_ref[...] = y.astype(o_ref.dtype)


def flatten_head(x, w_t, b_row, target_window, *, soft=False,
                 tile_m=512, tile_k=None, vmem_budget_bytes=None):
    """FlattenHead forward.

    x     : [B, n_vars, d_model, patch_num]  (any float dtype; streamed as-is)
    w_t   : [nf, N_pad]  from prepare_flatten_head_params
    b_row : [1, N_pad]   from prepare_flatten_head_params
    """
    B, n_vars, d_model, patch_num = x.shape
    nf = d_model * patch_num
    nf_w, n_pad = w_t.shape
    assert nf_w == nf, f"linear in_features {nf_w} != flattened nf {nf}"
    assert n_pad % 128 == 0 and b_row.shape == (1, n_pad)
    assert target_window <= n_pad

    auto_budget, multicore = _tpu_config()
    vmem_budget = auto_budget if vmem_budget_bytes is None else vmem_budget_bytes

    out_dtype = x.dtype
    bx = jnp.dtype(x.dtype).itemsize
    bw = jnp.dtype(w_t.dtype).itemsize
    bo = jnp.dtype(out_dtype).itemsize
    sub = max(_min_sublane(x.dtype), _min_sublane(out_dtype))

    M = B * n_vars

    # ---- reduction tile over nf ---------------------------------------------
    if tile_k is None:
        # Keep the whole weight resident (one K step, no accumulator) whenever its
        # slab fits half the budget; otherwise tile along a multiple-of-128 divisor
        # of nf so x never needs K-axis padding (zero-copy wrapper).
        if nf * n_pad * bw <= vmem_budget // 2 or nf % 128 != 0:
            tile_k = nf
            # TODO(synk): if nf % 128 != 0 AND the full weight overflows VMEM, pad nf
            # to a multiple of 128 at load time to enable K-tiling.
        else:
            cap = max(128, ((vmem_budget // 4) // (n_pad * bw)) // 128 * 128)
            tile_k = 128
            for cand in range(min(cap, nf), 127, -128):
                if nf % cand == 0:
                    tile_k = cand
                    break
    else:
        assert tile_k == nf or (tile_k % 128 == 0 and nf % tile_k == 0), \
            "explicit tile_k must equal nf or be a multiple of 128 dividing nf"
    k_steps = nf // tile_k

    # ---- M tile ---------------------------------------------------------------
    m_ceil = _round_up(M, sub)
    tile_m = max(sub, min(_round_up(tile_m, sub), m_ceil))
    if M < sub:
        tile_m = M                      # full-extent block: exempt from (8,128) rule
    # Give both v7x TensorCores work on the "parallel" m axis (gated to multi-TC chips).
    if multicore and M > 2 * sub and pl.cdiv(M, tile_m) < 2:
        tile_m = max(sub, _round_up(pl.cdiv(M, 2), sub))

    def _footprint(tm):
        fp = (2 * tm * tile_k * bx          # x tile, double-buffered
              + 2 * tile_k * n_pad * bw     # weight tile (conservatively x2)
              + 2 * tm * n_pad * bo         # output tile, double-buffered
              + 2 * 8 * n_pad * 4)          # bias row
        if k_steps > 1:
            fp += tm * n_pad * 4            # f32 accumulator scratch
        return fp

    while _footprint(tile_m) > vmem_budget and tile_m > sub:
        tile_m = max(sub, _round_up(tile_m // 2, sub))

    m_steps = pl.cdiv(M, tile_m)
    vmem_limit = int(max(_footprint(tile_m) + (4 << 20), 32 << 20))

    # Zero-copy wrapper: plain reshape, no cast (done in-kernel), no M/K padding.
    x2d = x.reshape(M, nf)
    out_shape = jax.ShapeDtypeStruct((M, n_pad), out_dtype)

    def _call(use_buffered):
        def _inv_spec(shape, index_map):
            # Grid-invariant block (fetched once): single-buffer when supported.
            if use_buffered:
                return pl.BlockSpec(shape, index_map, pipeline_mode=pl.Buffered(1))
            return pl.BlockSpec(shape, index_map)

        if k_steps == 1:
            kernel = functools.partial(_kernel_resident, soft=soft)
            grid = (m_steps,)
            in_specs = [
                pl.BlockSpec((tile_m, tile_k), lambda i: (i, 0)),
                _inv_spec((tile_k, n_pad), lambda i: (0, 0)),
                _inv_spec((1, n_pad), lambda i: (0, 0)),
            ]
            out_specs = pl.BlockSpec((tile_m, n_pad), lambda i: (i, 0))
            scratch = []
            dims = ("parallel",)
        else:
            kernel = functools.partial(_kernel_ktiled, soft=soft)
            grid = (m_steps, k_steps)
            # TODO(synk): raise pipeline depth (pl.Buffered(3)) on x/weight here if
            # profiling shows exposed weight DMA behind a small tile_m.
            in_specs = [
                pl.BlockSpec((tile_m, tile_k), lambda i, k: (i, k)),
                pl.BlockSpec((tile_k, n_pad), lambda i, k: (k, 0)),
                _inv_spec((1, n_pad), lambda i, k: (0, 0)),
            ]
            out_specs = pl.BlockSpec((tile_m, n_pad), lambda i, k: (i, 0))
            scratch = [pltpu.VMEM((tile_m, n_pad), jnp.float32)]
            dims = ("parallel", "arbitrary")

        return pl.pallas_call(
            kernel,
            out_shape=out_shape,
            grid_spec=pltpu.PrefetchScalarGridSpec(
                num_scalar_prefetch=0,
                grid=grid,
                in_specs=in_specs,
                out_specs=out_specs,
                scratch_shapes=scratch,
            ),
            compiler_params=pltpu.CompilerParams(
                dimension_semantics=dims,
                vmem_limit_bytes=vmem_limit,
            ),
        )(x2d, w_t, b_row)

    if hasattr(pl, "Buffered"):
        try:
            out2d = _call(True)
        except Exception:
            # pipeline_mode / Buffered(1) unsupported by this JAX: plain double-buffered specs.
            out2d = _call(False)
    else:
        out2d = _call(False)

    return out2d[:, :target_window].reshape(B, n_vars, target_window)


def _reference(x, weight, bias, soft=False):
    B, n_vars, d_model, patch_num = x.shape
    x2d = x.reshape(B, n_vars, d_model * patch_num)
    y = jnp.einsum("bvf,tf->bvt", x2d, weight) + bias
    if soft:
        y = jax.nn.softmax(y, axis=-1)
    return y


if __name__ == "__main__":
    key = jax.random.PRNGKey(0)

    def _make(B, n_vars, d_model, patch_num, target_window, k):
        nf = d_model * patch_num
        kx, kw, kb = jax.random.split(k, 3)
        x = jax.random.normal(kx, (B, n_vars, d_model, patch_num), dtype=jnp.float32)
        w = jax.random.normal(kw, (target_window, nf), dtype=jnp.float32) / jnp.sqrt(nf)
        b = jax.random.normal(kb, (target_window,), dtype=jnp.float32) * 0.01
        return x, w, b

    k1, k2 = jax.random.split(key)

    # Case 1: base shapes (nf = 128), bf16 weights, soft = False and soft = True.
    x, w, b = _make(2, 4, 16, 8, 32, k1)
    w_t, b_row, tw = prepare_flatten_head_params(w, b, param_dtype=jnp.bfloat16)
    for soft in (False, True):
        y = jax.block_until_ready(flatten_head(x, w_t, b_row, tw, soft=soft))
        y_ref = _reference(x, w, b, soft=soft)
        assert y.shape == y_ref.shape
        assert jnp.allclose(y, y_ref, atol=3e-2, rtol=3e-2), f"mismatch bf16 soft={soft}"

    # Case 2: f32 weights (f32 MXU path, sublane tile = 8).
    w_t32, b_row32, tw32 = prepare_flatten_head_params(w, b, param_dtype=jnp.float32)
    y = jax.block_until_ready(flatten_head(x, w_t32, b_row32, tw32, soft=False))
    y_ref = _reference(x, w, b, soft=False)
    assert jnp.allclose(y, y_ref, atol=3e-3, rtol=3e-3), "mismatch f32"

    # Case 3: exercise the K-tiled accumulator path (nf = 256, tile_k = 128 -> 2 K steps).
    x2, w2, b2 = _make(2, 4, 16, 16, 32, k2)
    w_t2, b_row2, tw2 = prepare_flatten_head_params(w2, b2, param_dtype=jnp.bfloat16)
    y2 = jax.block_until_ready(flatten_head(x2, w_t2, b_row2, tw2, soft=True, tile_k=128))
    y2_ref = _reference(x2, w2, b2, soft=True)
    assert y2.shape == y2_ref.shape
    assert jnp.allclose(y2, y2_ref, atol=3e-2, rtol=3e-2), "mismatch K-tiled soft=True"

    print("KERNEL_OK")
</pallas_src>

<mosaic_0001>
module attributes {stable_mosaic.version = 11 : i64} {
  func.func @_kernel_resident(%arg0: i32, %arg1: memref<8x128xf32, #tpu.memory_space<vmem>>, %arg2: memref<128x128xbf16, #tpu.memory_space<vmem>>, %arg3: memref<1x128xf32, #tpu.memory_space<vmem>>, %arg4: memref<8x128xf32, #tpu.memory_space<vmem>>) attributes {dimension_semantics = [#tpu.dimension_semantics<parallel>], iteration_bounds = array<i64: 1>, scalar_prefetch = 0 : i64, scratch_operands = 0 : i64, tpu.core_type = #tpu.core_type<tc>, window_params = [{transform_indices = @transform_0, window_bounds = array<i64: 8, 128>}, {pipeline_mode = #tpu.pipeline_mode<synchronous>, transform_indices = @transform_1, window_bounds = array<i64: 128, 128>}, {pipeline_mode = #tpu.pipeline_mode<synchronous>, transform_indices = @transform_2, window_bounds = array<i64: 1, 128>}, {transform_indices = @transform_3, window_bounds = array<i64: 8, 128>}]} {
    %c0 = arith.constant 0 : index
    %c0_0 = arith.constant 0 : index
    %0 = vector.load %arg1[%c0, %c0_0] : memref<8x128xf32, #tpu.memory_space<vmem>>, vector<8x128xf32>
    %1 = arith.truncf %0 : vector<8x128xf32> to vector<8x128xbf16>
    %c0_1 = arith.constant 0 : index
    %c0_2 = arith.constant 0 : index
    %2 = vector.load %arg2[%c0_1, %c0_2] : memref<128x128xbf16, #tpu.memory_space<vmem>>, vector<128x128xbf16>
    %cst = arith.constant dense<0.000000e+00> : vector<8x128xf32>
    %3 = tpu.matmul %1, %2, %cst {dimension_numbers = #tpu.dot_dimension_numbers<[1], [0], [0], [1], [0, 0, 1, 1], [], []>} : vector<8x128xbf16>, vector<128x128xbf16>, vector<8x128xf32> -> vector<8x128xf32>
    %c0_3 = arith.constant 0 : index
    %c0_4 = arith.constant 0 : index
    %4 = vector.load %arg3[%c0_3, %c0_4] : memref<1x128xf32, #tpu.memory_space<vmem>>, vector<1x128xf32>
    %5 = vector.broadcast %4 : vector<1x128xf32> to vector<8x128xf32>
    %6 = arith.addf %3, %5 : vector<8x128xf32>
    %c0_5 = arith.constant 0 : index
    %c0_6 = arith.constant 0 : index
    %7 = vector.load %arg4[%c0_5, %c0_6] : memref<8x128xf32, #tpu.memory_space<vmem>>, vector<8x128xf32>
    tpu.vector_store %arg4[%c0_5, %c0_6], %6 {strides = array<i32>} : memref<8x128xf32, #tpu.memory_space<vmem>>, vector<8x128xf32>,
    return
  }
  func.func @transform_0(%arg0: i32) -> (i32, i32) {
    %c0_i32 = arith.constant 0 : i32
    %c0_i32_0 = arith.constant 0 : i32
    return %arg0, %c0_i32 : i32, i32
  }
  func.func @transform_1(%arg0: i32) -> (i32, i32) {
    %c0_i32 = arith.constant 0 : i32
    %c0_i32_0 = arith.constant 0 : i32
    %c0_i32_1 = arith.constant 0 : i32
    return %c0_i32, %c0_i32_0 : i32, i32
  }
  func.func @transform_2(%arg0: i32) -> (i32, i32) {
    %c0_i32 = arith.constant 0 : i32
    %c0_i32_0 = arith.constant 0 : i32
    %c0_i32_1 = arith.constant 0 : i32
    return %c0_i32, %c0_i32_0 : i32, i32
  }
  func.func @transform_3(%arg0: i32) -> (i32, i32) {
    %c0_i32 = arith.constant 0 : i32
    %c0_i32_0 = arith.constant 0 : i32
    return %arg0, %c0_i32 : i32, i32
  }
}

module attributes {stable_mosaic.version = 11 : i64} {
  func.func @_kernel_resident(%arg0: i32, %arg1: memref<8x128xf32, #tpu.memory_space<vmem>>, %arg2: memref<128x128xbf16, #tpu.memory_space<vmem>>, %arg3: memref<1x128xf32, #tpu.memory_space<vmem>>, %arg4: memref<8x128xf32, #tpu.memory_space<vmem>>) attributes {dimension_semantics = [#tpu.dimension_semantics<parallel>], iteration_bounds = array<i64: 1>, scalar_prefetch = 0 : i64, scratch_operands = 0 : i64, tpu.core_type = #tpu.core_type<tc>, window_params = [{transform_indices = @transform_0, window_bounds = array<i64: 8, 128>}, {pipeline_mode = #tpu.pipeline_mode<synchronous>, transform_indices = @transform_1, window_bounds = array<i64: 128, 128>}, {pipeline_mode = #tpu.pipeline_mode<synchronous>, transform_indices = @transform_2, window_bounds = array<i64: 1, 128>}, {transform_indices = @transform_3, window_bounds = array<i64: 8, 128>}]} {
    %c0 = arith.constant 0 : index
    %c0_0 = arith.constant 0 : index
    %0 = vector.load %arg1[%c0, %c0_0] : memref<8x128xf32, #tpu.memory_space<vmem>>, vector<8x128xf32>
    %1 = arith.truncf %0 : vector<8x128xf32> to vector<8x128xbf16>
    %c0_1 = arith.constant 0 : index
    %c0_2 = arith.constant 0 : index
    %2 = vector.load %arg2[%c0_1, %c0_2] : memref<128x128xbf16, #tpu.memory_space<vmem>>, vector<128x128xbf16>
    %cst = arith.constant dense<0.000000e+00> : vector<8x128xf32>
    %3 = tpu.matmul %1, %2, %cst {dimension_numbers = #tpu.dot_dimension_numbers<[1], [0], [0], [1], [0, 0, 1, 1], [], []>} : vector<8x128xbf16>, vector<128x128xbf16>, vector<8x128xf32> -> vector<8x128xf32>
    %c0_3 = arith.constant 0 : index
    %c0_4 = arith.constant 0 : index
    %4 = vector.load %arg3[%c0_3, %c0_4] : memref<1x128xf32, #tpu.memory_space<vmem>>, vector<1x128xf32>
    %5 = vector.broadcast %4 : vector<1x128xf32> to vector<8x128xf32>
    %6 = arith.addf %3, %5 : vector<8x128xf32>
    %c0_5 = arith.constant 0 : index
    %c0_6 = arith.constant 0 : index
    %7 = vector.load %arg4[%c0_5, %c0_6] : memref<8x128xf32, #tpu.memory_space<vmem>>, vector<8x128xf32>
    tpu.vector_store %arg4[%c0_5, %c0_6], %6 {strides = array<i32>} : memref<8x128xf32, #tpu.memory_space<vmem>>, vector<8x128xf32>,
    return
  }
  func.func @transform_0(%arg0: i32) -> (i32, i32) {
    %c0_i32 = arith.constant 0 : i32
    %c0_i32_0 = arith.constant 0 : i32
    return %arg0, %c0_i32 : i32, i32
  }
  func.func @transform_1(%arg0: i32) -> (i32, i32) {
    %c0_i32 = arith.constant 0 : i32
    %c0_i32_0 = arith.constant 0 : i32
    %c0_i32_1 = arith.constant 0 : i32
    return %c0_i32, %c0_i32_0 : i32, i32
  }
  func.func @transform_2(%arg0: i32) -> (i32, i32) {
    %c0_i32 = arith.constant 0 : i32
    %c0_i32_0 = arith.constant 0 : i32
    %c0_i32_1 = arith.constant 0 : i32
    return %c0_i32, %c0_i32_0 : i32, i32
  }
  func.func @transform_3(%arg0: i32) -> (i32, i32) {
    %c0_i32 = arith.constant 0 : i32
    %c0_i32_0 = arith.constant 0 : i32
    return %arg0, %c0_i32 : i32, i32
  }
}

</mosaic_0001>

<bundles_post_ra>
// kernel: tpu_custom_call.1
= control target key start
LH: loop header
LB: loop body
LE: loop exit
PB: predicated region body
PF: predicated region fallthrough
CT: control target
= control target key end

     0   :  { %8 = vsyncpa [#allocation3], 0  ;;  %s370_s0 = inlined_call_operand.hbm [shape: f32[8,128], index: 0, kind: input, shape index: {}]   ;;  %s371_s1 = inlined_call_operand.hbm [shape: bf16[128,128], index: 1, kind: input, shape index: {}]   ;;  %s372_s2 = inlined_call_operand.vmem [shape: f32[1,128], index: 2, kind: input, shape index: {}]   ;;  %s373_s3 = inlined_call_operand.hbm [shape: f32[8,128], index: 3, kind: output, shape index: {}]  }
   0x1   :  { %9 = vsyncpa [#allocation6], 0 }
   0x2   :  { %10 = vsyncpa [#allocation4], 0  ;;  %s297_s12 = smov [#allocation2]   ;;  %s298_s14 = smov [#allocation5]  }
   0x3   :  { %s17_s13 = sshll.u32 %s297_s12, 4  ;;  %s26_s15 = sshll.u32 %s298_s14, 4  ;;  %s18_s13 = int_to_ptr.vmem [resolvable:$true] %s17_s13  ;;  %s324_s15 = int_to_ptr.vmem [resolvable:$true] %s26_s15 }
   0x4   :  { %s225_s18 = scalar_lea.hbm %s370_s0, 128 }
   0x5   :  { %p226_p0 = scmp.ne.s32.totalorder %s370_s0, %s225_s18  ;;  %p229_p1 = scmp.lt.u32.totalorder %s225_s18, %s370_s0 }
   0x7   :  { %p231_p2 = pnand %p229_p1, %p226_p0 }
   0x9   :  { %234 = shalt.err (!%p231_p2)
}
   0xa   :  { %s235_s23 = scalar_lea.vmem %s18_s13, 128  ;;  %p240_p4 = scmp.lt.s32.totalorder %s18_s13, %s18_s13 }
   0xb   :  { %p236_p3 = scmp.ne.s32.totalorder %s18_s13, %s235_s23  ;;  %p241_p5 = scmp.lt.s32.totalorder %s235_s23, %s235_s23 }
   0xd   :  { %p242_p6 = por %p241_p5, %p240_p4 }
   0xf   :  { %p243_p7 = pnand %p242_p6, %p236_p3 }
  0x11   :  { %246 = shalt.err (!%p243_p7)
}
  0x12   :  { %20 = dma.hbm_to_vmem [thread:$0]  %s370_s0, 128, %s18_s13, [#allocation3]  }
  0x13   :  { %s247_s28 = scalar_lea.hbm %s371_s1, 1024 }
  0x14   :  { %p248_p8 = scmp.ne.s32.totalorder %s371_s1, %s247_s28  ;;  %p251_p9 = scmp.lt.u32.totalorder %s247_s28, %s371_s1 }
  0x16   :  { %p253_p10 = pnand %p251_p9, %p248_p8 }
  0x18   :  { %256 = shalt.err (!%p253_p10)
}
  0x19   :  { %s257_s6 = scalar_lea.vmem %s324_s15, 1024  ;;  %p262_p12 = scmp.lt.s32.totalorder %s324_s15, %s324_s15 }
  0x1a   :  { %p258_p11 = scmp.ne.s32.totalorder %s324_s15, %s257_s6  ;;  %p263_p13 = scmp.lt.s32.totalorder %s257_s6, %s257_s6 }
  0x1c   :  { %p264_p0 = por %p263_p13, %p262_p12 }
  0x1e   :  { %p265_p1 = pnand %p264_p0, %p258_p11 }
  0x20   :  { %268 = shalt.err (!%p265_p1)
}
  0x21   :  { %s299_s0 = smov 64   ;;  %s300_s7 = smov 4  }
  0x22   :  { %32 = dma.hbm_to_vmem [thread:$0]  %s371_s1, 1024, %s324_s15, [#allocation6], %s299_s0, %s299_s0, %s300_s7  }
  0x23   :  { %291 = dma.done.wait [#allocation3], 128  }
  0x24   :  { %292 = vsyncadd [#allocation3], 4294967168 }
  0x25   :  { %293 = dma.done.wait [#allocation6], 1024  }
  0x26   :  { %294 = vsyncadd [#allocation6], 4294966272  ;;  %v301_v0 = vmov 0.0   ;;  %vm302_vm0 = vmmov 0   ;;  %v217_v1 = vld [vmem:[#allocation5] sm:$0xff]   ;;  %v218_v2 = vld [vmem:[#allocation5 + $0x8] sm:$0xff]  }
  0x27   :  { %190 = vmatprep.subr.bf16.mxu0 %v301_v0  ;;  %206 = vmatprep.mubr.msk.bf16.mxu0 %vm302_vm0, %v301_v0  ;;  %v219_v3 = vld [vmem:[#allocation5 + $0x10] sm:$0xff]   ;;  %v220_v4 = vld [vmem:[#allocation5 + $0x18] sm:$0xff]   ;;  %v221_v5 = vld [vmem:[#allocation5 + $0x20] sm:$0xff]   ;;  %s303_s11 = smov [#allocation7]  }
  0x28   :  { %191 = vmatpush3.bf16.msra.mxu0 %v217_v1  ;;  %v222_v6 = vld [vmem:[#allocation5 + $0x28] sm:$0xff]   ;;  %v223_v7 = vld [vmem:[#allocation5 + $0x30] sm:$0xff]   ;;  %v224_v8 = vld [vmem:[#allocation5 + $0x38] sm:$0xff]   ;;  %s162_s12 = sshll.u32 %s303_s11, 4  ;;  %s163_s12 = int_to_ptr.vmem [resolvable:$true] %s162_s12 }
  0x29   :  { %192 = vmatprep.subr.bf16.mxu0 %v301_v0  ;;  %v42_v9 = vld [vmem:[#allocation2] sm:$0xff]  ;;  %s269_s13 = scalar_lea.vmem %s163_s12, 128  ;;  %p274_p3 = scmp.lt.s32.totalorder %s163_s12, %s163_s12 }
  0x2a   :  { %v43_v10 = vpack.c.bf16 %v42_v9, %v42_v9  ;;  %v172_v11 = vld [vmem:[%s372_s2] ss:$0 sm:$0xff]  ;;  %p270_p2 = scmp.ne.s32.totalorder %s163_s12, %s269_s13  ;;  %p275_p4 = scmp.lt.s32.totalorder %s269_s13, %s269_s13 }
  0x2c   :  { %193 = vmatpush3.bf16.msra.mxu0 %v218_v2  ;;  %p276_p5 = por %p275_p4, %p274_p3 }
  0x2d   :  { %194 = vmatprep.subr.bf16.mxu0 %v301_v0 }
  0x2e   :  { %p277_p6 = pnand %p276_p5, %p270_p2 }
  0x30   :  { %195 = vmatpush3.bf16.msra.mxu0 %v219_v3 }
  0x31   :  { %196 = vmatprep.subr.bf16.mxu0 %v301_v0 }
  0x34   :  { %197 = vmatpush3.bf16.msra.mxu0 %v220_v4 }
  0x35   :  { %198 = vmatprep.subr.bf16.mxu0 %v301_v0 }
  0x38   :  { %199 = vmatpush3.bf16.msra.mxu0 %v221_v5 }
  0x39   :  { %200 = vmatprep.subr.bf16.mxu0 %v301_v0 }
  0x3c   :  { %201 = vmatpush3.bf16.msra.mxu0 %v222_v6 }
  0x3d   :  { %202 = vmatprep.subr.bf16.mxu0 %v301_v0 }
  0x40   :  { %203 = vmatpush3.bf16.msra.mxu0 %v223_v7 }
  0x41   :  { %204 = vmatprep.subr.bf16.mxu0 %v301_v0 }
  0x44   :  { %205 = vmatpush3.bf16.msra.mxu0 %v224_v8 }
  0x47   :  { %207 = vmatmul.mubr.bf16.vlgmr.msra.gmra.mrb[0].mxu0 %v43_v10 }
 0x11a   :  { %v149_v12 = vpop.f32.mrb[0].mxu0 }
 0x11b   :  { %v150_v13 = vadd.f32 %v172_v11, %v149_v12  ;;  %v208_v14 = vpop.f32.mrb[1].mxu0 }
 0x11c   :  { %v152_v15 = vpop.f32.mrb[2].mxu0 }
 0x11d   :  { %155 = vst [vmem:[#allocation7] sm:$0xff] %v150_v13  ;;  %v209_v16 = vpop.f32.mrb[3].mxu0 }
 0x11e   :  { %280 = shalt.err (!%p277_p6)
}
 0x11f   :  { %s281_s2 = scalar_lea.hbm %s373_s3, 128 }
 0x120   :  { %p282_p7 = scmp.ne.s32.totalorder %s373_s3, %s281_s2  ;;  %p285_p8 = scmp.lt.u32.totalorder %s281_s2, %s373_s3 }
 0x122   :  { %p287_p9 = pnand %p285_p8, %p282_p7 }
 0x124   :  { %290 = shalt.err (!%p287_p9)
}
 0x125   :  { %165 = dma.vmem_to_hbm [thread:$0]  %s163_s12, 128, %s373_s3, [#allocation4]  }
 0x126   :  { %295 = dma.done.wait [#allocation4], 128  }
 0x127   :  { %296 = vsyncadd [#allocation4], 4294967168 }
 0x128   :  { %169 = vsyncpa [#allocation3], 1 }
 0x129   :  { %170 = vsyncpa [#allocation6], 1 }
 0x12a   :  { %171 = vsyncpa [#allocation4], 1 }

// kernel: tpu_custom_call.1
= control target key start
LH: loop header
LB: loop body
LE: loop exit
PB: predicated region body
PF: predicated region fallthrough
CT: control target
= control target key end

     0   :  { %8 = vsyncpa [#allocation3], 0  ;;  %s370_s0 = inlined_call_operand.hbm [shape: f32[8,128], index: 0, kind: input, shape index: {}]   ;;  %s371_s1 = inlined_call_operand.hbm [shape: bf16[128,128], index: 1, kind: input, shape index: {}]   ;;  %s372_s2 = inlined_call_operand.vmem [shape: f32[1,128], index: 2, kind: input, shape index: {}]   ;;  %s373_s3 = inlined_call_operand.hbm [shape: f32[8,128], index: 3, kind: output, shape index: {}]  }
   0x1   :  { %9 = vsyncpa [#allocation6], 0 }
   0x2   :  { %10 = vsyncpa [#allocation4], 0  ;;  %s297_s12 = smov [#allocation2]   ;;  %s298_s14 = smov [#allocation5]  }
   0x3   :  { %s17_s13 = sshll.u32 %s297_s12, 4  ;;  %s26_s15 = sshll.u32 %s298_s14, 4  ;;  %s18_s13 = int_to_ptr.vmem [resolvable:$true] %s17_s13  ;;  %s324_s15 = int_to_ptr.vmem [resolvable:$true] %s26_s15 }
   0x4   :  { %s225_s18 = scalar_lea.hbm %s370_s0, 128 }
   0x5   :  { %p226_p0 = scmp.ne.s32.totalorder %s370_s0, %s225_s18  ;;  %p229_p1 = scmp.lt.u32.totalorder %s225_s18, %s370_s0 }
   0x7   :  { %p231_p2 = pnand %p229_p1, %p226_p0 }
   0x9   :  { %234 = shalt.err (!%p231_p2)
}
   0xa   :  { %s235_s23 = scalar_lea.vmem %s18_s13, 128  ;;  %p240_p4 = scmp.lt.s32.totalorder %s18_s13, %s18_s13 }
   0xb   :  { %p236_p3 = scmp.ne.s32.totalorder %s18_s13, %s235_s23  ;;  %p241_p5 = scmp.lt.s32.totalorder %s235_s23, %s235_s23 }
   0xd   :  { %p242_p6 = por %p241_p5, %p240_p4 }
   0xf   :  { %p243_p7 = pnand %p242_p6, %p236_p3 }
  0x11   :  { %246 = shalt.err (!%p243_p7)
}
  0x12   :  { %20 = dma.hbm_to_vmem [thread:$0]  %s370_s0, 128, %s18_s13, [#allocation3]  }
  0x13   :  { %s247_s28 = scalar_lea.hbm %s371_s1, 1024 }
  0x14   :  { %p248_p8 = scmp.ne.s32.totalorder %s371_s1, %s247_s28  ;;  %p251_p9 = scmp.lt.u32.totalorder %s247_s28, %s371_s1 }
  0x16   :  { %p253_p10 = pnand %p251_p9, %p248_p8 }
  0x18   :  { %256 = shalt.err (!%p253_p10)
}
  0x19   :  { %s257_s6 = scalar_lea.vmem %s324_s15, 1024  ;;  %p262_p12 = scmp.lt.s32.totalorder %s324_s15, %s324_s15 }
  0x1a   :  { %p258_p11 = scmp.ne.s32.totalorder %s324_s15, %s257_s6  ;;  %p263_p13 = scmp.lt.s32.totalorder %s257_s6, %s257_s6 }
  0x1c   :  { %p264_p0 = por %p263_p13, %p262_p12 }
  0x1e   :  { %p265_p1 = pnand %p264_p0, %p258_p11 }
  0x20   :  { %268 = shalt.err (!%p265_p1)
}
  0x21   :  { %s299_s0 = smov 64   ;;  %s300_s7 = smov 4  }
  0x22   :  { %32 = dma.hbm_to_vmem [thread:$0]  %s371_s1, 1024, %s324_s15, [#allocation6], %s299_s0, %s299_s0, %s300_s7  }
  0x23   :  { %291 = dma.done.wait [#allocation3], 128  }
  0x24   :  { %292 = vsyncadd [#allocation3], 4294967168 }
  0x25   :  { %293 = dma.done.wait [#allocation6], 1024  }
  0x26   :  { %294 = vsyncadd [#allocation6], 4294966272  ;;  %v301_v0 = vmov 0.0   ;;  %vm302_vm0 = vmmov 0   ;;  %v217_v1 = vld [vmem:[#allocation5] sm:$0xff]   ;;  %v218_v2 = vld [vmem:[#allocation5 + $0x8] sm:$0xff]  }
  0x27   :  { %190 = vmatprep.subr.bf16.mxu0 %v301_v0  ;;  %206 = vmatprep.mubr.msk.bf16.mxu0 %vm302_vm0, %v301_v0  ;;  %v219_v3 = vld [vmem:[#allocation5 + $0x10] sm:$0xff]   ;;  %v220_v4 = vld [vmem:[#allocation5 + $0x18] sm:$0xff]   ;;  %v221_v5 = vld [vmem:[#allocation5 + $0x20] sm:$0xff]   ;;  %s303_s11 = smov [#allocation7]  }
  0x28   :  { %191 = vmatpush3.bf16.msra.mxu0 %v217_v1  ;;  %v222_v6 = vld [vmem:[#allocation5 + $0x28] sm:$0xff]   ;;  %v223_v7 = vld [vmem:[#allocation5 + $0x30] sm:$0xff]   ;;  %v224_v8 = vld [vmem:[#allocation5 + $0x38] sm:$0xff]   ;;  %s162_s12 = sshll.u32 %s303_s11, 4  ;;  %s163_s12 = int_to_ptr.vmem [resolvable:$true] %s162_s12 }
  0x29   :  { %192 = vmatprep.subr.bf16.mxu0 %v301_v0  ;;  %v42_v9 = vld [vmem:[#allocation2] sm:$0xff]  ;;  %s269_s13 = scalar_lea.vmem %s163_s12, 128  ;;  %p274_p3 = scmp.lt.s32.totalorder %s163_s12, %s163_s12 }
  0x2a   :  { %v43_v10 = vpack.c.bf16 %v42_v9, %v42_v9  ;;  %v172_v11 = vld [vmem:[%s372_s2] ss:$0 sm:$0xff]  ;;  %p270_p2 = scmp.ne.s32.totalorder %s163_s12, %s269_s13  ;;  %p275_p4 = scmp.lt.s32.totalorder %s269_s13, %s269_s13 }
  0x2c   :  { %193 = vmatpush3.bf16.msra.mxu0 %v218_v2  ;;  %p276_p5 = por %p275_p4, %p274_p3 }
  0x2d   :  { %194 = vmatprep.subr.bf16.mxu0 %v301_v0 }
  0x2e   :  { %p277_p6 = pnand %p276_p5, %p270_p2 }
  0x30   :  { %195 = vmatpush3.bf16.msra.mxu0 %v219_v3 }
  0x31   :  { %196 = vmatprep.subr.bf16.mxu0 %v301_v0 }
  0x34   :  { %197 = vmatpush3.bf16.msra.mxu0 %v220_v4 }
  0x35   :  { %198 = vmatprep.subr.bf16.mxu0 %v301_v0 }
  0x38   :  { %199 = vmatpush3.bf16.msra.mxu0 %v221_v5 }
  0x39   :  { %200 = vmatprep.subr.bf16.mxu0 %v301_v0 }
  0x3c   :  { %201 = vmatpush3.bf16.msra.mxu0 %v222_v6 }
  0x3d   :  { %202 = vmatprep.subr.bf16.mxu0 %v301_v0 }
  0x40   :  { %203 = vmatpush3.bf16.msra.mxu0 %v223_v7 }
  0x41   :  { %204 = vmatprep.subr.bf16.mxu0 %v301_v0 }
  0x44   :  { %205 = vmatpush3.bf16.msra.mxu0 %v224_v8 }
  0x47   :  { %207 = vmatmul.mubr.bf16.vlgmr.msra.gmra.mrb[0].mxu0 %v43_v10 }
 0x11a   :  { %v149_v12 = vpop.f32.mrb[0].mxu0 }
 0x11b   :  { %v150_v13 = vadd.f32 %v172_v11, %v149_v12  ;;  %v208_v14 = vpop.f32.mrb[1].mxu0 }
 0x11c   :  { %v152_v15 = vpop.f32.mrb[2].mxu0 }
 0x11d   :  { %155 = vst [vmem:[#allocation7] sm:$0xff] %v150_v13  ;;  %v209_v16 = vpop.f32.mrb[3].mxu0 }
 0x11e   :  { %280 = shalt.err (!%p277_p6)
}
 0x11f   :  { %s281_s2 = scalar_lea.hbm %s373_s3, 128 }
 0x120   :  { %p282_p7 = scmp.ne.s32.totalorder %s373_s3, %s281_s2  ;;  %p285_p8 = scmp.lt.u32.totalorder %s281_s2, %s373_s3 }
 0x122   :  { %p287_p9 = pnand %p285_p8, %p282_p7 }
 0x124   :  { %290 = shalt.err (!%p287_p9)
}
 0x125   :  { %165 = dma.vmem_to_hbm [thread:$0]  %s163_s12, 128, %s373_s3, [#allocation4]  }
 0x126   :  { %295 = dma.done.wait [#allocation4], 128  }
 0x127   :  { %296 = vsyncadd [#allocation4], 4294967168 }
 0x128   :  { %169 = vsyncpa [#allocation3], 1 }
 0x129   :  { %170 = vsyncpa [#allocation6], 1 }
 0x12a   :  { %171 = vsyncpa [#allocation4], 1 }

</bundles_post_ra>
